<compile_context>
chip_gen: v7x
topology: tpu7x:2x2x1
jax: 0.10.0
libtpu: 0.0.40
codegen_flags: <defaults>
</compile_context>

<pallas_src>
import jax
import jax.numpy as jnp
from jax.experimental import pallas as pl
from jax.experimental.pallas import tpu as pltpu


_LANE = 128
_SUBLANE = 8


def _query_kernel(x_ref, wt_ref, o_ref):
    # One MXU projection per grid step.  x is cast to the weight's compute
    # dtype in-kernel (cheaper than a wrapper-side cast, which would add a
    # whole extra HBM read+write pass); accumulation stays in f32.
    x = x_ref[...]
    w = wt_ref[...]
    if x.dtype != w.dtype:
        x = x.astype(w.dtype)
    o_ref[...] = jnp.dot(x, w, preferred_element_type=jnp.float32).astype(o_ref.dtype)


def prepare_query_weight(w, *, compute_dtype=jnp.bfloat16):
    """One-time (at init, outside jit) prep of the nn.Linear weight.

    w: (dim_attn, dim_input) -- PyTorch nn.Linear layout.
    Returns (dim_input, dattn_pad): transposed so the kernel output is
    (rows, dattn) lane-dense, out-dim padded up to a multiple of 128 so stores
    are unmasked, cast to `compute_dtype` (bf16 feeds the MXU natively; pass
    jnp.float32 to preserve exact f32 semantics).
    """
    dattn, din = w.shape
    dattn_pad = pl.cdiv(dattn, _LANE) * _LANE
    wt = jnp.transpose(w)  # hoisted out of the forward path entirely
    if dattn_pad != dattn:
        wt = jnp.pad(wt, ((0, 0), (0, dattn_pad - dattn)))
    return wt.astype(compute_dtype)


def query_forward(x, wt, dim_attn, *, block_rows=1024):
    """Pallas Query.forward: y = x @ W.T (bias=False).

    x:        (..., dim_input) activations (output keeps this dtype).
    wt:       (dim_input, dattn_pad) from prepare_query_weight.
    dim_attn: true output width (static); lane padding is sliced off.
    """
    din, dattn_pad = wt.shape
    lead = x.shape[:-1]
    x2 = x.reshape(-1, din)
    n = x2.shape[0]

    # ---- row-tile sizing --------------------------------------------------
    n_align = pl.cdiv(n, _SUBLANE) * _SUBLANE
    tm = pl.cdiv(min(block_rows, n_align), _SUBLANE) * _SUBLANE

    x_bytes = x2.dtype.itemsize
    w_bytes = wt.dtype.itemsize
    o_bytes = x.dtype.itemsize
    weight_vmem = din * dattn_pad * w_bytes          # single-buffered below

    def tiles_vmem(t):
        # x tile + out tile, both double-buffered by the pipeline.
        return 2 * t * din * x_bytes + 2 * t * dattn_pad * o_bytes

    vmem_budget = 32 << 20  # conservative: v7x scoped default (64 MiB physical)
    while tm > _SUBLANE and weight_vmem + tiles_vmem(tm) > vmem_budget:
        tm = max(_SUBLANE, pl.cdiv(tm // 2, _SUBLANE) * _SUBLANE)
    # TODO(synk): if the resident weight alone exceeds the VMEM budget, tile
    # dattn/din on extra grid axes (f32 accumulator + pl.when init/finalize).

    # Give v7x's second TensorCore work: ensure >=2 "parallel" grid steps once
    # the row count is large enough that the ~0.35us/step overhead is noise.
    if n_align >= 1024 and pl.cdiv(n_align, tm) == 1:
        tm = pl.cdiv(n_align // 2, _SUBLANE) * _SUBLANE

    n_pad = pl.cdiv(n_align, tm) * tm
    if n_pad != n:
        x2 = jnp.pad(x2, ((0, n_pad - n), (0, 0)))

    cost = pl.CostEstimate(
        flops=2 * n_pad * din * dattn_pad,
        transcendentals=0,
        bytes_accessed=(n_pad * din * x_bytes
                        + din * dattn_pad * w_bytes
                        + n_pad * dattn_pad * o_bytes),
    )

    out = pl.pallas_call(
        _query_kernel,
        grid=(n_pad // tm,),
        in_specs=[
            pl.BlockSpec((tm, din), lambda i: (i, 0)),          # row tile of x
            # Grid-invariant weight: one VMEM copy instead of a double buffer.
            pl.BlockSpec((din, dattn_pad), lambda i: (0, 0),
                         pipeline_mode=pl.Buffered(1)),
        ],
        out_specs=pl.BlockSpec((tm, dattn_pad), lambda i: (i, 0)),
        out_shape=jax.ShapeDtypeStruct((n_pad, dattn_pad), x.dtype),
        compiler_params=pltpu.CompilerParams(
            dimension_semantics=("parallel",),                  # independent row tiles
            vmem_limit_bytes=int(min(max(weight_vmem + tiles_vmem(tm) + (4 << 20),
                                         32 << 20), 100 << 20)),
        ),
        cost_estimate=cost,
    )(x2, wt)

    return out[:n, :dim_attn].reshape(lead + (dim_attn,))


if __name__ == "__main__":
    key = jax.random.PRNGKey(0)
    B, S = 2, 8
    dim_input, dim_attn = 32, 96   # dim_attn deliberately NOT a multiple of 128

    kx, kq, kk, kv = jax.random.split(key, 4)
    x = jax.random.normal(kx, (B, S, dim_input), jnp.float32)
    # PyTorch nn.Linear weight layout: (out_features, in_features)
    w = jax.random.normal(kq, (dim_attn, dim_input), jnp.float32) * 0.1

    fwd = jax.jit(query_forward, static_argnums=(2,))

    # --- exact f32 path: bit-level semantics of the PyTorch module ---------
    wt_f32 = prepare_query_weight(w, compute_dtype=jnp.float32)
    y_f32 = fwd(x, wt_f32, dim_attn)
    jax.block_until_ready(y_f32)
    y_ref = jnp.einsum("bsd,ad->bsa", x, w)
    assert y_f32.shape == (B, S, dim_attn)
    assert jnp.allclose(y_f32, y_ref, atol=1e-4, rtol=1e-4)

    # --- bf16-fed MXU path (f32 accumulation): the recommended fast path ---
    wt_bf16 = prepare_query_weight(w)  # default bf16
    y_bf16 = fwd(x, wt_bf16, dim_attn)
    jax.block_until_ready(y_bf16)
    y_ref_bf16 = jnp.einsum(
        "bsd,ad->bsa",
        x.astype(jnp.bfloat16), w.astype(jnp.bfloat16),
        preferred_element_type=jnp.float32)
    assert jnp.allclose(y_bf16, y_ref_bf16, atol=1e-3, rtol=1e-3)
    assert jnp.allclose(y_bf16, y_ref, atol=3e-2, rtol=3e-2)

    # --- fused Q/K/V: one pallas_call, one x load, one wide lane-dense store
    wk_ = jax.random.normal(kk, (dim_attn, dim_input), jnp.float32) * 0.1
    wv_ = jax.random.normal(kv, (dim_attn, dim_input), jnp.float32) * 0.1
    w_qkv = jnp.concatenate([w, wk_, wv_], axis=0)            # (3*dim_attn, din)
    wt_qkv = prepare_query_weight(w_qkv, compute_dtype=jnp.float32)
    y_qkv = fwd(x, wt_qkv, 3 * dim_attn)
    jax.block_until_ready(y_qkv)
    qkv_ref = jnp.concatenate(
        [jnp.einsum("bsd,ad->bsa", x, wi) for wi in (w, wk_, wv_)], axis=-1)
    assert y_qkv.shape == (B, S, 3 * dim_attn)
    assert jnp.allclose(y_qkv, qkv_ref, atol=1e-4, rtol=1e-4)

    print("KERNEL_OK")
</pallas_src>

<mosaic_0001>
module attributes {stable_mosaic.version = 11 : i64} {
  func.func @_query_kernel(%arg0: i32, %arg1: memref<16x32xf32, #tpu.memory_space<vmem>>, %arg2: memref<32x128xf32, #tpu.memory_space<vmem>>, %arg3: memref<16x128xf32, #tpu.memory_space<vmem>>) attributes {dimension_semantics = [#tpu.dimension_semantics<parallel>], iteration_bounds = array<i64: 1>, scalar_prefetch = 0 : i64, scratch_operands = 0 : i64, tpu.core_type = #tpu.core_type<tc>, window_params = [{transform_indices = @transform_0, window_bounds = array<i64: 16, 32>}, {pipeline_mode = #tpu.pipeline_mode<synchronous>, transform_indices = @transform_1, window_bounds = array<i64: 32, 128>}, {transform_indices = @transform_2, window_bounds = array<i64: 16, 128>}]} {
    %c0 = arith.constant 0 : index
    %c0_0 = arith.constant 0 : index
    %0 = vector.load %arg1[%c0, %c0_0] : memref<16x32xf32, #tpu.memory_space<vmem>>, vector<16x32xf32>
    %c0_1 = arith.constant 0 : index
    %c0_2 = arith.constant 0 : index
    %1 = vector.load %arg2[%c0_1, %c0_2] : memref<32x128xf32, #tpu.memory_space<vmem>>, vector<32x128xf32>
    %cst = arith.constant dense<0.000000e+00> : vector<16x128xf32>
    %2 = tpu.matmul %0, %1, %cst {dimension_numbers = #tpu.dot_dimension_numbers<[1], [0], [0], [1], [0, 0, 1, 1], [], []>} : vector<16x32xf32>, vector<32x128xf32>, vector<16x128xf32> -> vector<16x128xf32>
    %c0_3 = arith.constant 0 : index
    %c0_4 = arith.constant 0 : index
    %3 = vector.load %arg3[%c0_3, %c0_4] : memref<16x128xf32, #tpu.memory_space<vmem>>, vector<16x128xf32>
    tpu.vector_store %arg3[%c0_3, %c0_4], %2 {strides = array<i32>} : memref<16x128xf32, #tpu.memory_space<vmem>>, vector<16x128xf32>,
    return
  }
  func.func @transform_0(%arg0: i32) -> (i32, i32) {
    %c0_i32 = arith.constant 0 : i32
    %c0_i32_0 = arith.constant 0 : i32
    return %arg0, %c0_i32 : i32, i32
  }
  func.func @transform_1(%arg0: i32) -> (i32, i32) {
    %c0_i32 = arith.constant 0 : i32
    %c0_i32_0 = arith.constant 0 : i32
    %c0_i32_1 = arith.constant 0 : i32
    return %c0_i32, %c0_i32_0 : i32, i32
  }
  func.func @transform_2(%arg0: i32) -> (i32, i32) {
    %c0_i32 = arith.constant 0 : i32
    %c0_i32_0 = arith.constant 0 : i32
    return %arg0, %c0_i32 : i32, i32
  }
}

</mosaic_0001>

<bundles_post_ra>
// kernel: query_forward.1
= control target key start
LH: loop header
LB: loop body
LE: loop exit
PB: predicated region body
PF: predicated region fallthrough
CT: control target
= control target key end

     0   :  { %7 = vsyncpa [#allocation3], 0  ;;  %s263_s0 = inlined_call_operand.hbm [shape: f32[16,32], index: 0, kind: input, shape index: {}]   ;;  %s264_s1 = inlined_call_operand.hbm [shape: f32[32,128], index: 1, kind: input, shape index: {}]   ;;  %s265_s2 = inlined_call_operand.vmem [shape: f32[16,128], index: 2, kind: output, shape index: {}]  }
   0x1   :  { %8 = vsyncpa [#allocation5], 0  ;;  %s214_s9 = smov [#allocation2]   ;;  %s166_s13 = scalar_lea.hbm %s263_s0, 256 }
   0x2   :  { %s14_s10 = sshll.u32 %s214_s9, 4  ;;  %p167_p0 = scmp.ne.s32.totalorder %s263_s0, %s166_s13  ;;  %s15_s10 = int_to_ptr.vmem [resolvable:$true] %s14_s10 }
   0x3   :  { %p170_p1 = scmp.lt.u32.totalorder %s166_s13, %s263_s0 }
   0x5   :  { %p172_p2 = pnand %p170_p1, %p167_p0 }
   0x7   :  { %175 = shalt.err (!%p172_p2)
}
   0x8   :  { %s176_s18 = scalar_lea.vmem %s15_s10, 256  ;;  %p181_p4 = scmp.lt.s32.totalorder %s15_s10, %s15_s10 }
   0x9   :  { %p177_p3 = scmp.ne.s32.totalorder %s15_s10, %s176_s18  ;;  %p182_p5 = scmp.lt.s32.totalorder %s176_s18, %s176_s18 }
   0xb   :  { %p183_p6 = por %p182_p5, %p181_p4 }
   0xd   :  { %p184_p7 = pnand %p183_p6, %p177_p3 }
   0xf   :  { %187 = shalt.err (!%p184_p7)
}
  0x10   :  { %s215_s19 = smov 128   ;;  %s216_s20 = smov 8  }
  0x11   :  { %20 = dma.hbm_to_vmem [thread:$0]  %s263_s0, 256, %s15_s10, [#allocation3], %s215_s19, %s215_s19, %s216_s20  }
  0x12   :  { %s217_s23 = smov [#allocation4]   ;;  %s188_s27 = scalar_lea.hbm %s264_s1, 512 }
  0x13   :  { %s26_s24 = sshll.u32 %s217_s23, 4  ;;  %p189_p8 = scmp.ne.s32.totalorder %s264_s1, %s188_s27  ;;  %s27_s24 = int_to_ptr.vmem [resolvable:$true] %s26_s24 }
  0x14   :  { %p192_p9 = scmp.lt.u32.totalorder %s188_s27, %s264_s1 }
  0x16   :  { %p194_p10 = pnand %p192_p9, %p189_p8 }
  0x18   :  { %197 = shalt.err (!%p194_p10)
}
  0x19   :  { %s198_s4 = scalar_lea.vmem %s27_s24, 512  ;;  %p203_p12 = scmp.lt.s32.totalorder %s27_s24, %s27_s24 }
  0x1a   :  { %p199_p11 = scmp.ne.s32.totalorder %s27_s24, %s198_s4  ;;  %p204_p13 = scmp.lt.s32.totalorder %s198_s4, %s198_s4 }
  0x1c   :  { %p205_p0 = por %p204_p13, %p203_p12 }
  0x1e   :  { %p206_p1 = pnand %p205_p0, %p199_p11 }
  0x20   :  { %209 = shalt.err (!%p206_p1)
}
  0x21   :  { %32 = dma.hbm_to_vmem [thread:$0]  %s264_s1, 512, %s27_s24, [#allocation5], %s215_s19, %s215_s19, %s216_s20  }
  0x22   :  { %210 = dma.done.wait [#allocation3], 256  }
  0x23   :  { %211 = vsyncadd [#allocation3], 4294967040 }
  0x24   :  { %212 = dma.done.wait [#allocation5], 512  }
  0x25   :  { %213 = vsyncadd [#allocation5], 4294966784  ;;  %vm45_vm0 = vcmask 261120   ;;  %v41_v0 = vld [vmem:[#allocation4] sm:$0xff]  ;;  %v42_v1 = vld [vmem:[#allocation4 + $0x8] sm:$0xff] }
  0x26   :  { %v43_v2 = vld [vmem:[#allocation4 + $0x10] sm:$0xff]  ;;  %v154_v3 = vpack.c.bf16 %v42_v1, %v41_v0  ;;  %v44_v4 = vld [vmem:[#allocation4 + $0x18] sm:$0xff] }
  0x27   :  { %v39_v5 = vld [vmem:[#allocation2] sm:$0xff]  ;;  %v158_v6 = vpack.c.bf16 %v44_v4, %v43_v2  ;;  %v40_v7 = vld [vmem:[#allocation2 + $0x8] sm:$0xff] }
  0x28   :  { %151 = vmatprep.mubr.msk.f32.mxu0 %vm45_vm0, %v39_v5  ;;  %155 = vmatprep.subr.bf16.mxu0 %v154_v3 }
  0x29   :  { %157 = vmatpush3.bf16.msra.mxu0 %v154_v3 }
  0x2a   :  { %159 = vmatprep.subr.bf16.mxu0 %v158_v6 }
  0x2d   :  { %161 = vmatpush3.bf16.msra.mxu0 %v158_v6 }
  0x30   :  { %152 = vmatmul.mubr.msk.f32.vlgmr.msra.gmra.mrb[0].mxu0 %vm45_vm0, %v40_v7 }
 0x103   :  { %v153_v8 = vpop.f32.mrb[0].mxu0 }
 0x104   :  { %128 = vst [vmem:[%s265_s2 + $0x8] sm:$0xff] %v153_v8  ;;  %v118_v9 = vpop.f32.mrb[1].mxu0 }
 0x105   :  { %127 = vst [vmem:[%s265_s2] sm:$0xff] %v118_v9 }
 0x106   :  { %133 = vsyncpa [#allocation3], 1 }
 0x107   :  { %134 = vsyncpa [#allocation5], 1 }

</bundles_post_ra>
